<compile_context>
chip_gen: v7x
topology: tpu7x:2x2x1
jax: 0.10.0
libtpu: 0.0.40
codegen_flags: <defaults>
</compile_context>

<pallas_src>
import jax
import jax.numpy as jnp
from jax.experimental import pallas as pl
from jax.experimental.pallas import tpu as pltpu

S = 64.0
M = 0.4


def _round_up(x: int, m: int) -> int:
    return ((x + m - 1) // m) * m


def cosface_kernel(logits_ref, labels_ref, out_ref):
    # logits_ref: (TILE_N, TILE_C) float32 ; labels_ref: (TILE_N, 1) int32
    tile_c = logits_ref.shape[1]
    col0 = pl.program_id(1) * tile_c                                  # global col offset
    lbl = labels_ref[...]                                             # (tn, 1)
    col = jax.lax.broadcasted_iota(jnp.int32, logits_ref.shape, 1) + col0
    # hit is True only at the target-class column, and only for rows with a
    # valid (!= -1) label.
    hit = (col == lbl) & (lbl != -1)
    out_ref[...] = logits_ref[...] * jnp.float32(S) - jnp.where(
        hit, jnp.float32(S * M), jnp.float32(0.0)
    )


def cosface(logits: jax.Array, labels: jax.Array, *, tile_n: int = 512,
            tile_c: int = 2048) -> jax.Array:
    """logits: [N, C] float32, labels: [N] int32 (-1 means 'skip margin')."""
    N, C = logits.shape
    labels2d = labels.reshape(N, 1).astype(jnp.int32)

    # Lane/sublane-aligned tiles, capped by the (rounded-up) array dims.
    tn = _round_up(min(tile_n, _round_up(N, 8)), 8)
    tc = _round_up(min(tile_c, _round_up(C, 128)), 128)

    Np = _round_up(N, tn)
    Cp = _round_up(C, tc)

    x = logits
    lbl = labels2d
    if (Np, Cp) != (N, C):
        x = jnp.pad(logits, ((0, Np - N), (0, Cp - C)))
    if Np != N:
        # Padded rows get label -1 so no margin is applied there; the rows are
        # sliced off below anyway.
        lbl = jnp.pad(labels2d, ((0, Np - N), (0, 0)), constant_values=-1)

    grid = (Np // tn, Cp // tc)

    out = pl.pallas_call(
        cosface_kernel,
        out_shape=jax.ShapeDtypeStruct((Np, Cp), logits.dtype),
        grid_spec=pltpu.PrefetchScalarGridSpec(
            num_scalar_prefetch=0,
            grid=grid,
            in_specs=[
                pl.BlockSpec((tn, tc), lambda i, j: (i, j)),
                # Same label block reused across all class tiles.
                pl.BlockSpec((tn, 1), lambda i, j: (i, 0)),
            ],
            out_specs=pl.BlockSpec((tn, tc), lambda i, j: (i, j)),
        ),
        compiler_params=pltpu.CompilerParams(
            dimension_semantics=("parallel", "parallel"),
            vmem_limit_bytes=32 << 20,
        ),
    )(x, lbl)

    if (Np, Cp) != (N, C):
        out = out[:N, :C]
    return out


def cosface_ref(logits, labels):
    # Pure-JAX reference mirroring the PyTorch forward.
    N, C = logits.shape
    col = jnp.arange(C, dtype=jnp.int32)[None, :]
    hit = (col == labels[:, None]) & (labels[:, None] != -1)
    return (logits - jnp.where(hit, M, 0.0)) * S


if __name__ == "__main__":
    key = jax.random.PRNGKey(0)

    # Test 1: small, already tile-aligned shapes.
    N, C = 8, 128
    k1, k2 = jax.random.split(key)
    logits = jax.random.normal(k1, (N, C), dtype=jnp.float32)
    labels = jax.random.randint(k2, (N,), 0, C, dtype=jnp.int32)
    labels = labels.at[1].set(-1).at[5].set(-1)   # rows with 'ignored' label

    out = cosface(logits, labels)
    jax.block_until_ready(out)
    expected = cosface_ref(logits, labels)
    assert jnp.allclose(out, expected, atol=1e-5, rtol=1e-5), "mismatch (aligned)"

    # Test 2: small, non-aligned shapes to exercise the pad/slice path.
    N2, C2 = 10, 200
    k3, k4 = jax.random.split(k2)
    logits2 = jax.random.normal(k3, (N2, C2), dtype=jnp.float32)
    labels2 = jax.random.randint(k4, (N2,), 0, C2, dtype=jnp.int32)
    labels2 = labels2.at[0].set(-1)

    out2 = cosface(logits2, labels2)
    jax.block_until_ready(out2)
    expected2 = cosface_ref(logits2, labels2)
    assert jnp.allclose(out2, expected2, atol=1e-5, rtol=1e-5), "mismatch (padded)"

    print("KERNEL_OK")
</pallas_src>

<mosaic_0001>
module attributes {stable_mosaic.version = 11 : i64} {
  func.func @cosface_kernel(%arg0: i32, %arg1: i32, %arg2: memref<8x128xf32, #tpu.memory_space<vmem>>, %arg3: memref<8x1xi32, #tpu.memory_space<vmem>>, %arg4: memref<8x128xf32, #tpu.memory_space<vmem>>) attributes {dimension_semantics = [#tpu.dimension_semantics<parallel>, #tpu.dimension_semantics<parallel>], iteration_bounds = array<i64: 1, 1>, scalar_prefetch = 0 : i64, scratch_operands = 0 : i64, tpu.core_type = #tpu.core_type<tc>, window_params = [{transform_indices = @transform_0, window_bounds = array<i64: 8, 128>}, {transform_indices = @transform_1, window_bounds = array<i64: 8, 1>}, {transform_indices = @transform_2, window_bounds = array<i64: 8, 128>}]} {
    %c128_i32 = arith.constant 128 : i32
    %0 = arith.muli %arg1, %c128_i32 : i32
    %c0 = arith.constant 0 : index
    %c0_0 = arith.constant 0 : index
    %1 = vector.load %arg3[%c0, %c0_0] : memref<8x1xi32, #tpu.memory_space<vmem>>, vector<8x1xi32>
    %2 = tpu.iota {dimensions = array<i32: 1>} : vector<8x128xi32>
    %3 = vector.broadcast %0 : i32 to vector<8x128xi32>
    %4 = arith.addi %2, %3 : vector<8x128xi32>
    %5 = vector.broadcast %1 : vector<8x1xi32> to vector<8x128xi32>
    %6 = arith.cmpi eq, %4, %5 : vector<8x128xi32>
    %c-1_i32 = arith.constant -1 : i32
    %7 = vector.broadcast %c-1_i32 : i32 to vector<8x1xi32>
    %8 = arith.cmpi ne, %1, %7 : vector<8x1xi32>
    %9 = vector.broadcast %8 : vector<8x1xi1> to vector<8x128xi1>
    %10 = arith.andi %6, %9 : vector<8x128xi1>
    %c0_1 = arith.constant 0 : index
    %c0_2 = arith.constant 0 : index
    %11 = vector.load %arg2[%c0_1, %c0_2] : memref<8x128xf32, #tpu.memory_space<vmem>>, vector<8x128xf32>
    %cst = arith.constant 6.400000e+01 : f32
    %12 = vector.broadcast %cst : f32 to vector<8x128xf32>
    %13 = arith.mulf %11, %12 : vector<8x128xf32>
    %cst_3 = arith.constant 2.560000e+01 : f32
    %cst_4 = arith.constant 0.000000e+00 : f32
    %14 = vector.broadcast %cst_3 : f32 to vector<8x128xf32>
    %15 = vector.broadcast %cst_4 : f32 to vector<8x128xf32>
    %16 = arith.select %10, %14, %15 : vector<8x128xi1>, vector<8x128xf32>
    %17 = arith.subf %13, %16 : vector<8x128xf32>
    %c0_5 = arith.constant 0 : index
    %c0_6 = arith.constant 0 : index
    %18 = vector.load %arg4[%c0_5, %c0_6] : memref<8x128xf32, #tpu.memory_space<vmem>>, vector<8x128xf32>
    tpu.vector_store %arg4[%c0_5, %c0_6], %17 {strides = array<i32>} : memref<8x128xf32, #tpu.memory_space<vmem>>, vector<8x128xf32>,
    return
  }
  func.func @transform_0(%arg0: i32, %arg1: i32) -> (i32, i32) {
    %c0_i32 = arith.constant 0 : i32
    return %arg0, %arg1 : i32, i32
  }
  func.func @transform_1(%arg0: i32, %arg1: i32) -> (i32, i32) {
    %c0_i32 = arith.constant 0 : i32
    %c0_i32_0 = arith.constant 0 : i32
    return %arg0, %c0_i32 : i32, i32
  }
  func.func @transform_2(%arg0: i32, %arg1: i32) -> (i32, i32) {
    %c0_i32 = arith.constant 0 : i32
    return %arg0, %arg1 : i32, i32
  }
}

</mosaic_0001>

<bundles_post_ra>
// kernel: tpu_custom_call.1
= control target key start
LH: loop header
LB: loop body
LE: loop exit
PB: predicated region body
PF: predicated region fallthrough
CT: control target
= control target key end

     0   :  { %s112_s0 = inlined_call_operand.vmem [shape: f32[8,128], index: 0, kind: input, shape index: {}]   ;;  %s113_s1 = inlined_call_operand.vmem [shape: s32[8,1], index: 1, kind: input, shape index: {}]   ;;  %s114_s2 = inlined_call_operand.hbm [shape: f32[8,128], index: 2, kind: output, shape index: {}]  }
   0x1   :  { %v13_v0 = vld [vmem:[%s113_s1] sm:$0xff] }
   0x2   :  { %7 = vsyncpa [#allocation3], 0  ;;  %v76_v1 = vmov 0   ;;  %vm22_vm0 = vcmp.ne.s32.totalorder %v13_v0, 4294967295  ;;  %v14_v3 = vlaneseq  ;;  %v29_v6 = vld [vmem:[%s112_s0] sm:$0xff]  ;;  %s77_s13 = smov [#allocation2]  }
   0x3   :  { %51 = vset.pattern.permute.xlu0 %v76_v1  ;;  %v23_v2 = vsel %vm22_vm0, 1, %v76_v1  ;;  %v30_v8 = vmul.f32 64.0, %v29_v6  ;;  %s40_s1 = sshll.u32 %s77_s13, 4  ;;  %v78_v9 = vmov 0.0   ;;  %s41_s1 = int_to_ptr.vmem [resolvable:$true] %s40_s1 }
   0x4   :  { %19 = vperm.xlu0 %51, %v13_v0   ;;  %v15_v5 = vand.u32 127, %v14_v3  ;;  %s52_s14 = scalar_lea.vmem %s41_s1, 128  ;;  %p57_p1 = scmp.lt.s32.totalorder %s41_s1, %s41_s1 }
   0x5   :  { %p53_p0 = scmp.ne.s32.totalorder %s41_s1, %s52_s14  ;;  %p58_p2 = scmp.lt.s32.totalorder %s52_s14, %s52_s14 }
   0x7   :  { %p59_p3 = por %p58_p2, %p57_p1 }
   0x8   :  { %25 = vperm.xlu0 %51, %v23_v2  }
   0x9   :  { %p60_p4 = pnand %p59_p3, %p53_p0 }
  0x83   :  { %v20_v4 = vpop.permute.xlu0 %19 }
  0x84   :  { %vm21_vm1 = vcmp.eq.s32.totalorder %v15_v5, %v20_v4 }
  0x87   :  { %v26_v7 = vpop.permute.xlu0 %25 }
  0x88   :  { %vm27_vm2 = vcmp.eq.s32.totalorder %v26_v7, 1 }
  0x89   :  { %vm28_vm3 = vmand %vm21_vm1, %vm27_vm2 }
  0x8a   :  { %v31_v10 = vsel %vm28_vm3, 25.6, %v78_v9 }
  0x8b   :  { %v32_v11 = vsub.f32 %v30_v8, %v31_v10 }
  0x8d   :  { %33 = vst [vmem:[#allocation2] sm:$0xff] %v32_v11 }
  0x8e   :  { %63 = shalt.err (!%p60_p4)
}
  0x8f   :  { %s64_s16 = scalar_lea.hbm %s114_s2, 128 }
  0x90   :  { %p65_p5 = scmp.ne.s32.totalorder %s114_s2, %s64_s16  ;;  %p68_p6 = scmp.lt.u32.totalorder %s64_s16, %s114_s2 }
  0x92   :  { %p70_p7 = pnand %p68_p6, %p65_p5 }
  0x94   :  { %73 = shalt.err (!%p70_p7)
}
  0x95   :  { %43 = dma.vmem_to_hbm [thread:$0]  %s41_s1, 128, %s114_s2, [#allocation3]  }
  0x96   :  { %74 = dma.done.wait [#allocation3], 128  }
  0x97   :  { %75 = vsyncadd [#allocation3], 4294967168 }
  0x98   :  { %47 = vsyncpa [#allocation3], 1 }

</bundles_post_ra>
